<compile_context>
chip_gen: v5e
topology: v5e:2x2
jax: 0.10.0
libtpu: 0.0.40
codegen_flags: <defaults>
</compile_context>

<pallas_src>
import math

import jax
import jax.numpy as jnp
from jax.experimental import pallas as pl
from jax.experimental.pallas import tpu as pltpu

LANE = 128  # TPU lane width; all hidden activations are kept lane-dense (padded to 128)


def _round_up(x, m):
    return (x + m - 1) // m * m


def _softplus(x):
    # numerically stable softplus (VPU/EUP)
    return jnp.maximum(x, 0.0) + jnp.log1p(jnp.exp(-jnp.abs(x)))


def _mish(x):
    return x * jnp.tanh(_softplus(x))


# ---------------------------------------------------------------------------
# Packed-parameter layout
# ---------------------------------------------------------------------------
def _block_layout(dsed, state_dim, subgoal_dim, mlp_dims):
    """Row layout of the packed (R, 128) weight array.

    Blocks whose LHS is the 128-lane-padded activation get 128 rows (zero rows
    multiply zero/irrelevant lanes); the state / subgoal partial-GEMM blocks
    keep their true K, rounded up to a sublane multiple of 8 so every block
    starts on an (8,128)-tile boundary.
    """
    assert dsed <= LANE and 4 * dsed <= LANE
    assert max(mlp_dims) <= LANE and state_dim <= LANE and subgoal_dim <= LANE
    # TODO(synk): dims > 128 (e.g. mlp_dims=[1024,512,256]) would need lane/K tiling.

    names = ["wte1", "wte2", "w0_t", "w0_s", "w0_g"]
    rows = [LANE, LANE, LANE, _round_up(state_dim, 8), _round_up(subgoal_dim, 8)]
    for i in range(1, len(mlp_dims)):
        names.append(f"w{i}")
        rows.append(LANE)
    names.append("wf")
    rows.append(LANE)

    offs, off = {}, 0
    for n, r in zip(names, rows):
        offs[n] = (off, r)
        off += r
    return offs, off


def pack_guider_params(params, dsed, state_dim, subgoal_dim, mlp_dims):
    """Pack all weights into one (R,128) array and all biases into one (8,128)."""
    offs, total_rows = _block_layout(dsed, state_dim, subgoal_dim, mlp_dims)

    def put(buf, name, w):
        o, rpad = offs[name]
        r, c = w.shape
        assert r <= rpad and c <= LANE
        return buf.at[o:o + r, :c].set(w.astype(jnp.float32))

    wpack = jnp.zeros((total_rows, LANE), jnp.float32)
    wpack = put(wpack, "wte1", params["wte1"])
    wpack = put(wpack, "wte2", params["wte2"])
    w0 = params["w0"]
    wpack = put(wpack, "w0_t", w0[:dsed])
    wpack = put(wpack, "w0_s", w0[dsed:dsed + state_dim])
    wpack = put(wpack, "w0_g", w0[dsed + state_dim:])
    for i in range(1, len(mlp_dims)):
        wpack = put(wpack, f"w{i}", params[f"w{i}"])
    wpack = put(wpack, "wf", params["wf"])

    n_bias = len(mlp_dims) + 3  # te1, te2, trunk layers, final
    bpack = jnp.zeros((_round_up(n_bias, 8), LANE), jnp.float32)
    bias_list = ([params["bte1"], params["bte2"]]
                 + [params[f"b{i}"] for i in range(len(mlp_dims))]
                 + [params["bf"]])
    for i, b in enumerate(bias_list):
        bpack = bpack.at[i:i + 1, :b.shape[1]].set(b.astype(jnp.float32))
    return wpack, bpack


# ---------------------------------------------------------------------------
# Pallas kernel
# ---------------------------------------------------------------------------
def _make_guider_kernel(dsed, state_dim, subgoal_dim, mlp_dims, offs):
    n_layers = len(mlp_dims)
    half = dsed // 2
    log_coef = math.log(10000.0) / (half - 1)

    def kernel(t_ref, state_ref, subgoal_ref, wp_ref, bp_ref, out_ref):
        f32 = jnp.float32
        B = t_ref.shape[0]

        def w(name, rows=None):
            o, rpad = offs[name]
            r = rpad if rows is None else rows
            return wp_ref[o:o + r, :]           # static slice, sublane-aligned

        def b(i):
            return bp_ref[i:i + 1, :]           # (1, 128), zero-padded bias row

        # --- SinusoidalPosEmb(dsed), computed lane-dense inside the kernel ---
        j = jax.lax.broadcasted_iota(jnp.int32, (B, LANE), 1)
        k = jnp.where(j < half, j, j - half).astype(f32)
        args = t_ref[...] * jnp.exp(-log_coef * k)          # (B,1)*(B,128)
        emb = jnp.where(j < half, jnp.sin(args),
                        jnp.where(j < dsed, jnp.cos(args), 0.0))

        # --- diffusion_step_encoder: Linear -> Mish -> Linear ---
        h = jnp.dot(emb, w("wte1"), preferred_element_type=f32) + b(0)
        h = _mish(h)
        temb = jnp.dot(h, w("wte2"), preferred_element_type=f32) + b(1)
        # temb is (B,128): real in lanes [0,dsed), exact zeros elsewhere.

        # --- trunk layer 0: concat(temb, state, subgoal) folded into 3 GEMMs ---
        x = (jnp.dot(temb, w("w0_t"), preferred_element_type=f32)
             + jnp.dot(state_ref[...], w("w0_s", state_dim),
                       preferred_element_type=f32)
             + jnp.dot(subgoal_ref[...], w("w0_g", subgoal_dim),
                       preferred_element_type=f32)
             + b(2))
        x = jnp.maximum(x, 0.0)

        # --- remaining trunk layers: Linear -> ReLU ---
        for i in range(1, n_layers):
            x = jnp.maximum(
                jnp.dot(x, w(f"w{i}"), preferred_element_type=f32) + b(2 + i),
                0.0)

        # --- final_layer ---
        y = jnp.dot(x, w("wf"), preferred_element_type=f32) + b(2 + n_layers)
        out_ref[...] = y[:, :subgoal_dim].astype(out_ref.dtype)

    return kernel


# ---------------------------------------------------------------------------
# Wrapper
# ---------------------------------------------------------------------------
def guider_forward(wpack, bpack, state, subgoal, timestep,
                   dsed, mlp_dims):
    B, state_dim = state.shape
    subgoal_dim = subgoal.shape[1]

    # mirror the PyTorch timestep handling (scalar or per-batch)
    timestep = jnp.asarray(timestep)
    if timestep.ndim == 0:
        timestep = timestep[None]
    t_col = jnp.broadcast_to(timestep.astype(jnp.float32), (B,)).reshape(B, 1)

    offs, _ = _block_layout(dsed, state_dim, subgoal_dim, mlp_dims)
    kernel = _make_guider_kernel(dsed, state_dim, subgoal_dim, mlp_dims, offs)

    # advisory cost estimate so XLA schedules this tiny call sensibly
    dims = [dsed + state_dim + subgoal_dim] + list(mlp_dims) + [subgoal_dim]
    flops = 2 * B * (dsed * 4 * dsed + 4 * dsed * dsed
                     + sum(a * c for a, c in zip(dims[:-1], dims[1:])))
    transcendentals = B * (2 * dsed + 3 * 4 * dsed)   # sin/cos + mish(exp,log1p,tanh)
    bytes_accessed = 4 * int(wpack.size + bpack.size + t_col.size
                             + state.size + subgoal.size + B * subgoal_dim)

    vmem = pl.BlockSpec(memory_space=pltpu.MemorySpace.VMEM)
    return pl.pallas_call(
        kernel,
        out_shape=jax.ShapeDtypeStruct((B, subgoal_dim), jnp.float32),
        in_specs=[vmem] * 5,
        out_specs=vmem,
        cost_estimate=pl.CostEstimate(flops=flops,
                                      transcendentals=transcendentals,
                                      bytes_accessed=bytes_accessed),
    )(t_col, state, subgoal, wpack, bpack)


# ---------------------------------------------------------------------------
# Parameter construction (deterministic, synthetic) + pure-JAX reference
# ---------------------------------------------------------------------------
def init_guider_params(key, dsed, state_dim, subgoal_dim, mlp_dims):
    """Weights as (in, out); biases as (1, out)."""
    def linear(k, din, dout):
        kw, kb = jax.random.split(k)
        bound = 1.0 / math.sqrt(din)
        w = jax.random.uniform(kw, (din, dout), jnp.float32, -bound, bound)
        b = jax.random.uniform(kb, (1, dout), jnp.float32, -bound, bound)
        return w, b

    keys = jax.random.split(key, 3 + len(mlp_dims))
    params = {}
    params["wte1"], params["bte1"] = linear(keys[0], dsed, 4 * dsed)
    params["wte2"], params["bte2"] = linear(keys[1], 4 * dsed, dsed)
    last = dsed + state_dim + subgoal_dim      # pcd_encoder is None
    for i, d in enumerate(mlp_dims):
        params[f"w{i}"], params[f"b{i}"] = linear(keys[2 + i], last, d)
        last = d
    params["wf"], params["bf"] = linear(keys[2 + len(mlp_dims)], last, subgoal_dim)
    return params


def guider_reference(params, state, subgoal, timestep, dsed, mlp_dims):
    """Pure-JAX reference of the module's forward (pcd_encoder=None)."""
    B = state.shape[0]
    t = jnp.broadcast_to(jnp.asarray(timestep, jnp.float32).reshape(-1), (B,))
    half = dsed // 2
    c = math.log(10000.0) / (half - 1)
    freqs = jnp.exp(jnp.arange(half, dtype=jnp.float32) * -c)
    args = t[:, None] * freqs[None, :]
    emb = jnp.concatenate([jnp.sin(args), jnp.cos(args)], axis=-1)

    hi = jax.lax.Precision.HIGHEST
    h = jnp.dot(emb, params["wte1"], precision=hi) + params["bte1"]
    h = _mish(h)
    temb = jnp.dot(h, params["wte2"], precision=hi) + params["bte2"]
    x = jnp.concatenate([temb, state, subgoal], axis=1)
    for i in range(len(mlp_dims)):
        x = jax.nn.relu(jnp.dot(x, params[f"w{i}"], precision=hi) + params[f"b{i}"])
    return jnp.dot(x, params["wf"], precision=hi) + params["bf"]


# ---------------------------------------------------------------------------
if __name__ == "__main__":
    # small, module-consistent shapes
    B = 2
    dsed = 32            # diffusion_step_encoder.out_dim
    state_dim = 16
    subgoal_dim = 8
    mlp_dims = [64, 48, 32]

    key = jax.random.PRNGKey(0)
    kp, ks, kg = jax.random.split(key, 3)

    params = init_guider_params(kp, dsed, state_dim, subgoal_dim, mlp_dims)
    state = jax.random.normal(ks, (B, state_dim), jnp.float32)
    subgoal = jax.random.normal(kg, (B, subgoal_dim), jnp.float32)
    timestep = jnp.int32(7)          # scalar timestep, expanded to batch
    # pcd is unused because pcd_encoder is None
    # TODO(synk): pcd_encoder branch not implemented (module supports pcd_encoder=None)

    wpack, bpack = pack_guider_params(params, dsed, state_dim, subgoal_dim, mlp_dims)

    out = guider_forward(wpack, bpack, state, subgoal, timestep, dsed, mlp_dims)
    jax.block_until_ready(out)

    ref = guider_reference(params, state, subgoal, timestep, dsed, mlp_dims)
    assert out.shape == (B, subgoal_dim) and out.dtype == jnp.float32
    assert bool(jnp.allclose(out, ref, atol=1e-3, rtol=1e-3)), (out, ref)
    print("KERNEL_OK")
</pallas_src>

<mosaic_0001>
module attributes {stable_mosaic.version = 11 : i64} {
  func.func @kernel(%arg0: memref<2x1xf32, #tpu.memory_space<vmem>>, %arg1: memref<2x16xf32, #tpu.memory_space<vmem>>, %arg2: memref<2x8xf32, #tpu.memory_space<vmem>>, %arg3: memref<792x128xf32, #tpu.memory_space<vmem>>, %arg4: memref<8x128xf32, #tpu.memory_space<vmem>>, %arg5: memref<2x8xf32, #tpu.memory_space<vmem>>) attributes {dimension_semantics = [], scalar_prefetch = 0 : i64, scratch_operands = 0 : i64, tpu.core_type = #tpu.core_type<tc>} {
    %0 = tpu.iota {dimensions = array<i32: 1>} : vector<2x128xi32>
    %c16_i32 = arith.constant 16 : i32
    %1 = vector.broadcast %c16_i32 : i32 to vector<2x128xi32>
    %2 = arith.cmpi slt, %0, %1 : vector<2x128xi32>
    %c16_i32_0 = arith.constant 16 : i32
    %3 = vector.broadcast %c16_i32_0 : i32 to vector<2x128xi32>
    %4 = arith.subi %0, %3 : vector<2x128xi32>
    %5 = arith.select %2, %0, %4 : vector<2x128xi1>, vector<2x128xi32>
    %6 = arith.sitofp %5 : vector<2x128xi32> to vector<2x128xf32>
    %c0 = arith.constant 0 : index
    %c0_1 = arith.constant 0 : index
    %7 = vector.load %arg0[%c0, %c0_1] : memref<2x1xf32, #tpu.memory_space<vmem>>, vector<2x1xf32>
    %cst = arith.constant -0.614022672 : f32
    %8 = vector.broadcast %cst : f32 to vector<2x128xf32>
    %9 = arith.mulf %8, %6 : vector<2x128xf32>
    %10 = math.exp %9 : vector<2x128xf32>
    %11 = vector.broadcast %7 : vector<2x1xf32> to vector<2x128xf32>
    %12 = arith.mulf %11, %10 : vector<2x128xf32>
    %c16_i32_2 = arith.constant 16 : i32
    %13 = vector.broadcast %c16_i32_2 : i32 to vector<2x128xi32>
    %14 = arith.cmpi slt, %0, %13 : vector<2x128xi32>
    %15 = math.sin %12 : vector<2x128xf32>
    %c32_i32 = arith.constant 32 : i32
    %16 = vector.broadcast %c32_i32 : i32 to vector<2x128xi32>
    %17 = arith.cmpi slt, %0, %16 : vector<2x128xi32>
    %18 = math.cos %12 : vector<2x128xf32>
    %cst_3 = arith.constant 0.000000e+00 : f32
    %19 = vector.broadcast %cst_3 : f32 to vector<2x128xf32>
    %20 = arith.select %17, %18, %19 : vector<2x128xi1>, vector<2x128xf32>
    %21 = arith.select %14, %15, %20 : vector<2x128xi1>, vector<2x128xf32>
    %c0_4 = arith.constant 0 : index
    %c0_5 = arith.constant 0 : index
    %22 = vector.load %arg3[%c0_4, %c0_5] : memref<792x128xf32, #tpu.memory_space<vmem>>, vector<128x128xf32>
    %cst_6 = arith.constant dense<0.000000e+00> : vector<2x128xf32>
    %23 = tpu.matmul %21, %22, %cst_6 {dimension_numbers = #tpu.dot_dimension_numbers<[1], [0], [0], [1], [0, 0, 1, 1], [], []>} : vector<2x128xf32>, vector<128x128xf32>, vector<2x128xf32> -> vector<2x128xf32>
    %c0_7 = arith.constant 0 : index
    %c0_8 = arith.constant 0 : index
    %24 = vector.load %arg4[%c0_7, %c0_8] : memref<8x128xf32, #tpu.memory_space<vmem>>, vector<1x128xf32>
    %25 = vector.broadcast %24 : vector<1x128xf32> to vector<2x128xf32>
    %26 = arith.addf %23, %25 : vector<2x128xf32>
    %cst_9 = arith.constant 0.000000e+00 : f32
    %27 = vector.broadcast %cst_9 : f32 to vector<2x128xf32>
    %28 = arith.maximumf %26, %27 : vector<2x128xf32>
    %29 = math.absf %26 : vector<2x128xf32>
    %cst_10 = arith.constant 0.000000e+00 : f32
    %30 = vector.broadcast %cst_10 : f32 to vector<2x128xf32>
    %31 = arith.subf %30, %29 : vector<2x128xf32>
    %32 = math.exp %31 : vector<2x128xf32>
    %33 = math.log1p %32 : vector<2x128xf32>
    %34 = arith.addf %28, %33 : vector<2x128xf32>
    %35 = math.tanh %34 : vector<2x128xf32>
    %36 = arith.mulf %26, %35 : vector<2x128xf32>
    %c128 = arith.constant 128 : index
    %c0_11 = arith.constant 0 : index
    %37 = vector.load %arg3[%c128, %c0_11] : memref<792x128xf32, #tpu.memory_space<vmem>>, vector<128x128xf32>
    %cst_12 = arith.constant dense<0.000000e+00> : vector<2x128xf32>
    %38 = tpu.matmul %36, %37, %cst_12 {dimension_numbers = #tpu.dot_dimension_numbers<[1], [0], [0], [1], [0, 0, 1, 1], [], []>} : vector<2x128xf32>, vector<128x128xf32>, vector<2x128xf32> -> vector<2x128xf32>
    %c1 = arith.constant 1 : index
    %c0_13 = arith.constant 0 : index
    %39 = vector.load %arg4[%c1, %c0_13] : memref<8x128xf32, #tpu.memory_space<vmem>>, vector<1x128xf32>
    %40 = vector.broadcast %39 : vector<1x128xf32> to vector<2x128xf32>
    %41 = arith.addf %38, %40 : vector<2x128xf32>
    %c256 = arith.constant 256 : index
    %c0_14 = arith.constant 0 : index
    %42 = vector.load %arg3[%c256, %c0_14] : memref<792x128xf32, #tpu.memory_space<vmem>>, vector<128x128xf32>
    %cst_15 = arith.constant dense<0.000000e+00> : vector<2x128xf32>
    %43 = tpu.matmul %41, %42, %cst_15 {dimension_numbers = #tpu.dot_dimension_numbers<[1], [0], [0], [1], [0, 0, 1, 1], [], []>} : vector<2x128xf32>, vector<128x128xf32>, vector<2x128xf32> -> vector<2x128xf32>
    %c0_16 = arith.constant 0 : index
    %c0_17 = arith.constant 0 : index
    %44 = vector.load %arg1[%c0_16, %c0_17] : memref<2x16xf32, #tpu.memory_space<vmem>>, vector<2x16xf32>
    %c384 = arith.constant 384 : index
    %c0_18 = arith.constant 0 : index
    %45 = vector.load %arg3[%c384, %c0_18] : memref<792x128xf32, #tpu.memory_space<vmem>>, vector<16x128xf32>
    %cst_19 = arith.constant dense<0.000000e+00> : vector<2x128xf32>
    %46 = tpu.matmul %44, %45, %cst_19 {dimension_numbers = #tpu.dot_dimension_numbers<[1], [0], [0], [1], [0, 0, 1, 1], [], []>} : vector<2x16xf32>, vector<16x128xf32>, vector<2x128xf32> -> vector<2x128xf32>
    %47 = arith.addf %43, %46 : vector<2x128xf32>
    %c0_20 = arith.constant 0 : index
    %c0_21 = arith.constant 0 : index
    %48 = vector.load %arg2[%c0_20, %c0_21] : memref<2x8xf32, #tpu.memory_space<vmem>>, vector<2x8xf32>
    %c400 = arith.constant 400 : index
    %c0_22 = arith.constant 0 : index
    %49 = vector.load %arg3[%c400, %c0_22] : memref<792x128xf32, #tpu.memory_space<vmem>>, vector<8x128xf32>
    %cst_23 = arith.constant dense<0.000000e+00> : vector<2x128xf32>
    %50 = tpu.matmul %48, %49, %cst_23 {dimension_numbers = #tpu.dot_dimension_numbers<[1], [0], [0], [1], [0, 0, 1, 1], [], []>} : vector<2x8xf32>, vector<8x128xf32>, vector<2x128xf32> -> vector<2x128xf32>
    %51 = arith.addf %47, %50 : vector<2x128xf32>
    %c2 = arith.constant 2 : index
    %c0_24 = arith.constant 0 : index
    %52 = vector.load %arg4[%c2, %c0_24] : memref<8x128xf32, #tpu.memory_space<vmem>>, vector<1x128xf32>
    %53 = vector.broadcast %52 : vector<1x128xf32> to vector<2x128xf32>
    %54 = arith.addf %51, %53 : vector<2x128xf32>
    %cst_25 = arith.constant 0.000000e+00 : f32
    %55 = vector.broadcast %cst_25 : f32 to vector<2x128xf32>
    %56 = arith.maximumf %54, %55 : vector<2x128xf32>
    %c408 = arith.constant 408 : index
    %c0_26 = arith.constant 0 : index
    %57 = vector.load %arg3[%c408, %c0_26] : memref<792x128xf32, #tpu.memory_space<vmem>>, vector<128x128xf32>
    %cst_27 = arith.constant dense<0.000000e+00> : vector<2x128xf32>
    %58 = tpu.matmul %56, %57, %cst_27 {dimension_numbers = #tpu.dot_dimension_numbers<[1], [0], [0], [1], [0, 0, 1, 1], [], []>} : vector<2x128xf32>, vector<128x128xf32>, vector<2x128xf32> -> vector<2x128xf32>
    %c3 = arith.constant 3 : index
    %c0_28 = arith.constant 0 : index
    %59 = vector.load %arg4[%c3, %c0_28] : memref<8x128xf32, #tpu.memory_space<vmem>>, vector<1x128xf32>
    %60 = vector.broadcast %59 : vector<1x128xf32> to vector<2x128xf32>
    %61 = arith.addf %58, %60 : vector<2x128xf32>
    %cst_29 = arith.constant 0.000000e+00 : f32
    %62 = vector.broadcast %cst_29 : f32 to vector<2x128xf32>
    %63 = arith.maximumf %61, %62 : vector<2x128xf32>
    %c536 = arith.constant 536 : index
    %c0_30 = arith.constant 0 : index
    %64 = vector.load %arg3[%c536, %c0_30] : memref<792x128xf32, #tpu.memory_space<vmem>>, vector<128x128xf32>
    %cst_31 = arith.constant dense<0.000000e+00> : vector<2x128xf32>
    %65 = tpu.matmul %63, %64, %cst_31 {dimension_numbers = #tpu.dot_dimension_numbers<[1], [0], [0], [1], [0, 0, 1, 1], [], []>} : vector<2x128xf32>, vector<128x128xf32>, vector<2x128xf32> -> vector<2x128xf32>
    %c4 = arith.constant 4 : index
    %c0_32 = arith.constant 0 : index
    %66 = vector.load %arg4[%c4, %c0_32] : memref<8x128xf32, #tpu.memory_space<vmem>>, vector<1x128xf32>
    %67 = vector.broadcast %66 : vector<1x128xf32> to vector<2x128xf32>
    %68 = arith.addf %65, %67 : vector<2x128xf32>
    %cst_33 = arith.constant 0.000000e+00 : f32
    %69 = vector.broadcast %cst_33 : f32 to vector<2x128xf32>
    %70 = arith.maximumf %68, %69 : vector<2x128xf32>
    %c664 = arith.constant 664 : index
    %c0_34 = arith.constant 0 : index
    %71 = vector.load %arg3[%c664, %c0_34] : memref<792x128xf32, #tpu.memory_space<vmem>>, vector<128x128xf32>
    %cst_35 = arith.constant dense<0.000000e+00> : vector<2x128xf32>
    %72 = tpu.matmul %70, %71, %cst_35 {dimension_numbers = #tpu.dot_dimension_numbers<[1], [0], [0], [1], [0, 0, 1, 1], [], []>} : vector<2x128xf32>, vector<128x128xf32>, vector<2x128xf32> -> vector<2x128xf32>
    %c5 = arith.constant 5 : index
    %c0_36 = arith.constant 0 : index
    %73 = vector.load %arg4[%c5, %c0_36] : memref<8x128xf32, #tpu.memory_space<vmem>>, vector<1x128xf32>
    %74 = vector.broadcast %73 : vector<1x128xf32> to vector<2x128xf32>
    %75 = arith.addf %72, %74 : vector<2x128xf32>
    %76 = vector.extract_strided_slice %75 {offsets = [0, 0], sizes = [2, 8], strides = [1, 1]} : vector<2x128xf32> to vector<2x8xf32>
    %c0_37 = arith.constant 0 : index
    %c0_38 = arith.constant 0 : index
    %77 = vector.load %arg5[%c0_37, %c0_38] : memref<2x8xf32, #tpu.memory_space<vmem>>, vector<2x8xf32>
    tpu.vector_store %arg5[%c0_37, %c0_38], %76 {strides = array<i32>} : memref<2x8xf32, #tpu.memory_space<vmem>>, vector<2x8xf32>,
    return
  }
}

</mosaic_0001>

<bundles_post_ra>
// kernel: tpu_custom_call.1
= control target key start
LH: loop header
LB: loop body
LE: loop exit
PB: predicated region body
PF: predicated region fallthrough
CT: control target
= control target key end

     0   :  { %10 = vsyncpa [#allocation3], 0  ;;  %s961_s0 = inlined_call_operand.vmem [shape: f32[2,1], index: 0, kind: input, shape index: {}]   ;;  %s962_s1 = inlined_call_operand.vmem [shape: f32[2,16], index: 1, kind: input, shape index: {}]   ;;  %s963_s2 = inlined_call_operand.vmem [shape: f32[2,8], index: 2, kind: input, shape index: {}]   ;;  %s964_s3 = inlined_call_operand.hbm [shape: f32[792,128], index: 3, kind: input, shape index: {}]   ;;  %s965_s4 = inlined_call_operand.hbm [shape: f32[8,128], index: 4, kind: input, shape index: {}]   ;;  %s966_s5 = inlined_call_operand.hbm [shape: f32[2,8], index: 5, kind: output, shape index: {}]  }
   0x1   :  { %11 = vsyncpa [#allocation6], 0 }
   0x2   :  { %12 = vsyncpa [#allocation4], 0  ;;  %s23_s20 = sshll.u32 %s964_s3, 4  ;;  %s816_s21 = smov [#allocation2]   ;;  %s24_s20 = int_to_ptr.hbm [resolvable:$true] %s23_s20 }
   0x3   :  { %s25_s22 = sshll.u32 %s816_s21, 4  ;;  %s37_s25 = sshll.u32 %s965_s4, 4  ;;  %s26_s22 = int_to_ptr.vmem [resolvable:$true] %s25_s22  ;;  %s38_s25 = int_to_ptr.hbm [resolvable:$true] %s37_s25 }
   0x4   :  { %s817_s26 = smov 128   ;;  %s818_s27 = smov 8  }
   0x5   :  { %31 = dma.hbm_to_vmem [thread:$0]  %s24_s20, 12672, %s26_s22, [#allocation3], %s817_s26, %s817_s26, %s818_s27  }
   0x6   :  { %s819_s28 = smov [#allocation5]  }
   0x7   :  { %s39_s29 = sshll.u32 %s819_s28, 4  ;;  %s40_s29 = int_to_ptr.vmem [resolvable:$true] %s39_s29 }
   0x8   :  { %42 = dma.hbm_to_vmem [thread:$0]  %s38_s25, 128, %s40_s29, [#allocation6]  }
   0x9   :  { %810 = dma.done.wait [#allocation3], 12672  }
   0xa   :  { %811 = vsyncadd [#allocation3], 4294954624 }
   0xb   :  { %812 = dma.done.wait [#allocation6], 128  }
   0xc   :  { %813 = vsyncadd [#allocation6], 4294967168  ;;  %v820_v0 = vmov 0   ;;  %v57_v1 = vld [vmem:[%s961_s0] sm:$0x3]  ;;  %v51_v2 = vlaneseq  ;;  %v394_v12 = vld [vmem:[#allocation2 + $0x78] sm:$0xff] }
   0xd   :  { %723 = vset.pattern.permute.xlu0 %v820_v0  ;;  %v393_v13 = vld [vmem:[#allocation2 + $0x70] sm:$0xff]  ;;  %397 = vmatpush.msra.mxu0 %v394_v12  ;;  %v392_v15 = vld [vmem:[#allocation2 + $0x68] sm:$0xff]  ;;  %v391_v17 = vld [vmem:[#allocation2 + $0x60] sm:$0xff]  ;;  %v821_v32 = vmov 683565275   ;;  %s691_s10 = sshll.u32 %s966_s5, 4  ;;  %s692_s10 = int_to_ptr.hbm [resolvable:$true] %s691_s10 }
   0xe   :  { %63 = vperm.xlu0 %723, %v57_v1   ;;  %v868_v3 = vand.u32 127, %v51_v2  ;;  %v390_v19 = vld [vmem:[#allocation2 + $0x58] sm:$0xff]  ;;  %v389_v22 = vld [vmem:[#allocation2 + $0x50] sm:$0xff]  ;;  %v388_v23 = vld [vmem:[#allocation2 + $0x48] sm:$0xff]  ;;  %v822_v34 = vmov 2475754826  }
   0xf   :  { %398 = vmatpush.msra.mxu0 %v393_v13  ;;  %v387_v27 = vld [vmem:[#allocation2 + $0x40] sm:$0xff]  ;;  %v386_v29 = vld [vmem:[#allocation2 + $0x38] sm:$0xff]  ;;  %v823_v37 = vmov 2131351028   ;;  %v824_v40 = vmov 2102212464  }
  0x10   :  { %v702_v4 = vadd.s32 4294967280, %v868_v3  ;;  %vm53_vm0 = vcmp.lt.s32.totalorder %v868_v3, 16  ;;  %v385_v42 = vld [vmem:[#allocation2 + $0x30] sm:$0xff]  ;;  %v825_v44 = vmov 920167782   ;;  %v384_v52 = vld [vmem:[#allocation2 + $0x28] sm:$0xff] }
  0x11   :  { %399 = vmatpush.msra.mxu0 %v392_v15  ;;  %v826_v47 = vmov 1326507024   ;;  %v383_v58 = vld [vmem:[#allocation2 + $0x20] sm:$0xff]  ;;  %v382_v63 = vld [vmem:[#allocation2 + $0x18] sm:$0xff] }
  0x12   :  { %v55_v5 = vsel %vm53_vm0, %v868_v3, %v702_v4 }
  0x13   :  { %v56_v6 = vcvt.s32.f32 %v55_v5  ;;  %400 = vmatpush.msra.mxu0 %v391_v17 }
  0x15   :  { %v58_v7 = vmul.f32 -0.6140227, %v56_v6  ;;  %401 = vmatpush.msra.mxu0 %v390_v19  ;;  %v379_v19 = vld [vmem:[#allocation2] sm:$0xff] }
  0x17   :  { %v59_v8 = vmul.f32 1.442695, %v58_v7  ;;  %402 = vmatpush.msra.mxu0 %v389_v22 }
  0x19   :  { %730 = vpow2.f32 %v59_v8  ;;  %403 = vmatpush.msra.mxu0 %v388_v23 }
  0x1b   :  { %404 = vmatpush.msra.mxu0 %v387_v27 }
  0x1d   :  { %405 = vmatpush.msra.mxu0 %v386_v29 }
  0x1f   :  { %v731_v9 = vpop.eup %730  ;;  %406 = vmatpush.msra.mxu0 %v385_v42 }
  0x21   :  { %407 = vmatpush.msra.mxu0 %v384_v52 }
  0x23   :  { %408 = vmatpush.msra.mxu0 %v383_v58 }
  0x25   :  { %409 = vmatpush.msra.mxu0 %v382_v63 }
  0x80   :  { %v64_v10 = vpop.permute.xlu0 %63 }
  0x81   :  { %v875_v11 = vmul.f32 %v731_v9, %v64_v10  ;;  %v381_v10 = vld [vmem:[#allocation2 + $0x10] sm:$0xff] }
  0x82   :  { %410 = vmatpush.msra.mxu0 %v381_v10 }
  0x83   :  { %v70_v14 = vand.u32 2139095040, %v875_v11  ;;  %v67_v20 = vand.u32 2147483647, %v875_v11  ;;  %vm69_vm13 = vcmp.lt.s32.totalorder %v875_v11, 0 }
  0x85   :  { %v71_v16 = vshrl.u32 %v70_v14, 23  ;;  %v74_v24 = vand.u32 8388607, %v67_v20  ;;  %v380_v14 = vld [vmem:[#allocation2 + $0x8] sm:$0xff]  ;;  %vm68_vm14 = vcmp.le.f32.partialorder %v67_v20, 0.7853982 }
  0x86   :  { %411 = vmatpush.msra.mxu0 %v380_v14 }
  0x87   :  { %v703_v18 = vadd.s32 4294967169, %v71_v16  ;;  %v75_v30 = vor.u32 8388608, %v74_v24 }
  0x88   :  { %412 = vmatpush.msra.mxu0 %v379_v19 }
  0x89   :  { %v77_v21 = vadd.s32 1, %v703_v18  ;;  %v896_v55 = vshll.u32 %v75_v30, 8 }
  0x8b   :  { %vm78_vm1 = vcmp.gt.s32.totalorder %v77_v21, 0  ;;  %v116_v4 = vand.u32 65535, %v896_v55  ;;  %v117_v5 = vshrl.u32 %v896_v55, 16 }
  0x8c   :  { %v79_v25 = vsel %vm78_vm1, %v77_v21, 0 }
  0x8d   :  { %v81_v26 = vand.u32 31, %v79_v25  ;;  %v883_v31 = vshrl.u32 %v79_v25, 5 }
  0x8f   :  { %v881_v28 = vsub.s32 32, %v81_v26  ;;  %v84_v33 = vshll.u32 %v821_v32, %v81_v26  ;;  %v87_v35 = vshll.u32 %v822_v34, %v81_v26  ;;  %v90_v39 = vshll.u32 %v823_v37, %v81_v26 }
  0x90   :  { %v93_v43 = vshll.u32 %v824_v40, %v81_v26  ;;  %v96_v46 = vshll.u32 %v825_v44, %v81_v26  ;;  %vm99_vm2 = vcmp.lt.s32.totalorder %v883_v31, 1  ;;  %vm102_vm3 = vcmp.lt.s32.totalorder %v883_v31, 4 }
  0x91   :  { %v85_v36 = vshrl.u32 %v822_v34, %v881_v28  ;;  %v88_v38 = vshrl.u32 %v823_v37, %v881_v28  ;;  %v91_v41 = vshrl.u32 %v824_v40, %v881_v28  ;;  %v94_v45 = vshrl.u32 %v825_v44, %v881_v28 }
  0x92   :  { %v97_v48 = vshrl.u32 %v826_v47, %v881_v28  ;;  %vm101_vm4 = vcmp.lt.s32.totalorder %v883_v31, 3  ;;  %vm100_vm5 = vcmp.lt.s32.totalorder %v883_v31, 2 }
  0x93   :  { %v891_v49 = vor.u32 %v85_v36, %v84_v33  ;;  %v893_v50 = vor.u32 %v88_v38, %v87_v35  ;;  %v92_v51 = vor.u32 %v91_v41, %v90_v39  ;;  %v95_v53 = vor.u32 %v94_v45, %v93_v43 }
  0x94   :  { %v98_v54 = vor.u32 %v97_v48, %v96_v46  ;;  %v83_v38 = vshrl.u32 %v821_v32, %v881_v28 }
  0x95   :  { %v107_v56 = vsel %vm99_vm2, %v891_v49, %v893_v50  ;;  %v111_v57 = vsel %vm99_vm2, %v893_v50, %v92_v51  ;;  %v108_v59 = vsel %vm102_vm3, %v95_v53, 920167782  ;;  %v104_v35 = vsel %vm102_vm3, %v92_v51, 2102212464 }
  0x96   :  { %v112_v60 = vsel %vm102_vm3, %v98_v54, 1326507024  ;;  %v109_v61 = vsel %vm101_vm4, %v92_v51, %v108_v59  ;;  %v103_v44 = vsel %vm99_vm2, %v83_v38, %v891_v49  ;;  %v105_v45 = vsel %vm101_vm4, %v893_v50, %v104_v35 }
  0x97   :  { %v113_v62 = vsel %vm101_vm4, %v95_v53, %v112_v60  ;;  %v110_v1 = vsel %vm100_vm5, %v107_v56, %v109_v61  ;;  %v106_v32 = vsel %vm100_vm5, %v103_v44, %v105_v45 }
  0x98   :  { %v114_v2 = vsel %vm100_vm5, %v111_v57, %v113_v62  ;;  %v140_v8 = vand.u32 65535, %v110_v1  ;;  %v141_v9 = vshrl.u32 %v110_v1, 16  ;;  %v160_v54 = vmul.u32 %v896_v55, %v106_v32  ;;  %v449_v32 = vld [vmem:[#allocation2 + $0xf8] sm:$0xff] }
  0x99   :  { %v118_v6 = vand.u32 65535, %v114_v2  ;;  %v119_v7 = vshrl.u32 %v114_v2, 16  ;;  %452 = vmatpush.msra.mxu1 %v449_v32  ;;  %v573_v32 = vld [vmem:[#allocation2 + $0x1d0] sm:$0xff] }
  0x9a   :  { %v143_v15 = vmul.u32 %v141_v9, %v116_v4  ;;  %v144_v16 = vmul.u32 %v140_v8, %v117_v5  ;;  %v142_v22 = vmul.u32 %v140_v8, %v116_v4  ;;  %v145_v26 = vmul.u32 %v141_v9, %v117_v5 }
  0x9b   :  { %v121_v12 = vmul.u32 %v119_v7, %v116_v4  ;;  %v122_v13 = vmul.u32 %v118_v6, %v117_v5  ;;  %v120_v17 = vmul.u32 %v118_v6, %v116_v4  ;;  %v123_v21 = vmul.u32 %v119_v7, %v117_v5 }
  0x9c   :  { %v146_v23 = vshll.u32 %v143_v15, 16  ;;  %v148_v29 = vshll.u32 %v144_v16, 16  ;;  %v147_v42 = vshrl.u32 %v143_v15, 16  ;;  %v149_v48 = vshrl.u32 %v144_v16, 16 }
  0x9d   :  { %v124_v18 = vshll.u32 %v121_v12, 16  ;;  %v126_v24 = vshll.u32 %v122_v13, 16  ;;  %v125_v39 = vshrl.u32 %v121_v12, 16  ;;  %v127_v46 = vshrl.u32 %v122_v13, 16 }
  0x9e   :  { %vm150_vm7 = vc.u32 %v142_v22, %v146_v23  ;;  %v152_v30 = vadd.s32 %v146_v23, %v142_v22 }
  0x9f   :  { %vm128_vm6 = vc.u32 %v120_v17, %v124_v18  ;;  %v130_v25 = vadd.s32 %v124_v18, %v120_v17  ;;  %v151_v34 = vsel %vm150_vm7, 1, %v820_v0  ;;  %vm210_vm7 = vweird.f32 %v875_v11 }
  0xa0   :  { %v129_v27 = vsel %vm128_vm6, 1, %v820_v0  ;;  %v153_v37 = vadd.s32 %v151_v34, %v145_v26  ;;  %vm154_vm9 = vc.u32 %v152_v30, %v148_v29  ;;  %v156_v28 = vadd.s32 %v152_v30, %v148_v29 }
  0xa1   :  { %v131_v33 = vadd.s32 %v129_v27, %v123_v21  ;;  %vm132_vm8 = vc.u32 %v130_v25, %v126_v24  ;;  %v155_v41 = vsel %vm154_vm9, 1, %v820_v0  ;;  %vm222_vm6 = vcmp.lt.s32.totalorder %v868_v3, 32  ;;  %v440_v3 = vld [vmem:[#allocation2 + $0xb0] sm:$0xff] }
  0xa2   :  { %v133_v36 = vsel %vm132_vm8, 1, %v820_v0  ;;  %v157_v43 = vadd.s32 %v155_v41, %v153_v37  ;;  %vm537_vm9 = vcmask 64512  }
  0xa3   :  { %v135_v40 = vadd.s32 %v133_v36, %v131_v33 }
  0xa4   :  { %v158_v51 = vadd.s32 %v157_v43, %v147_v42 }
  0xa5   :  { %v136_v47 = vadd.s32 %v135_v40, %v125_v39 }
  0xa6   :  { %v159_v0 = vadd.s32 %v158_v51, %v149_v48 }
  0xa7   :  { %v137_v52 = vadd.s32 %v136_v47, %v127_v46 }
  0xa8   :  { %v163_v53 = vadd.s32 1, %v159_v0 }
  0xa9   :  { %vm162_vm10 = vc.u32 %v137_v52, %v156_v28  ;;  %v161_v31 = vadd.s32 %v156_v28, %v137_v52 }
  0xaa   :  { %v164_v56 = vsel %vm162_vm10, %v163_v53, %v159_v0  ;;  %v448_v0 = vld [vmem:[#allocation2 + $0xf0] sm:$0xff]  ;;  %v447_v53 = vld [vmem:[#allocation2 + $0xe8] sm:$0xff]  ;;  %vm682_vm10 = vcmask 58368  }
  0xab   :  { %v165_v49 = vadd.s32 %v164_v56, %v160_v54  ;;  %453 = vmatpush.msra.mxu1 %v448_v0  ;;  %v446_v54 = vld [vmem:[#allocation2 + $0xe0] sm:$0xff]  ;;  %v445_v56 = vld [vmem:[#allocation2 + $0xd8] sm:$0xff]  ;;  %v572_v0 = vld [vmem:[#allocation2 + $0x1c8] sm:$0xff] }
  0xad   :  { %v166_v57 = vadd.s32 536870912, %v165_v49  ;;  %454 = vmatpush.msra.mxu1 %v447_v53  ;;  %v571_v53 = vld [vmem:[#allocation2 + $0x1c0] sm:$0xff] }
  0xaf   :  { %v167_v58 = vshrl.u32 %v166_v57, 30  ;;  %455 = vmatpush.msra.mxu1 %v446_v54  ;;  %v442_v57 = vld [vmem:[#allocation2 + $0xc0] sm:$0xff]  ;;  %v725_v54 = vld [vmem:[#allocation5 + $0x1] ss:$0 sm:$0xff] }
  0xb1   :  { %v168_v59 = vshll.u32 %v167_v58, 30  ;;  %v191_v16 = vsub.s32 4, %v167_v58  ;;  %456 = vmatpush.msra.mxu1 %v445_v56 }
  0xb3   :  { %v169_v50 = vsub.s32 %v165_v49, %v168_v59  ;;  %v192_v22 = vsel %vm69_vm13, %v191_v16, %v167_v58  ;;  %v443_v49 = vld [vmem:[#allocation2 + $0xc8] sm:$0xff]  ;;  %v441_v58 = vld [vmem:[#allocation2 + $0xb8] sm:$0xff] }
  0xb4   :  { %v194_v25 = vsel %vm68_vm14, 0, %v192_v22  ;;  %v439_v59 = vld [vmem:[#allocation2 + $0xa8] sm:$0xff]  ;;  %v480_v22 = vld [vmem:[#allocation2 + $0x140] sm:$0xff] }
  0xb5   :  { %vm170_vm11 = vcmp.lt.s32.totalorder %v169_v50, 0  ;;  %v171_v60 = vsub.s32 0, %v169_v50  ;;  %v211_v33 = vadd.s32 3, %v194_v25  ;;  %v367_v37 = vand.u32 3, %v194_v25 }
  0xb7   :  { %v172_v61 = vsel %vm170_vm11, %v171_v60, %v169_v50  ;;  %v212_v38 = vand.u32 3, %v211_v33  ;;  %vm368_vm15 = vcmp.lt.s32.totalorder %v367_v37, 2  ;;  %vm369_vm1 = vcmp.eq.s32.totalorder %v367_v37, 0  ;;  %v438_v60 = vld [vmem:[#allocation2 + $0xa0] sm:$0xff]  ;;  %v477_v33 = vld [vmem:[#allocation2 + $0x128] sm:$0xff] }
  0xb8   :  { %v173_v62 = vclz %v172_v61  ;;  %vm372_vm2 = vcmp.eq.s32.totalorder %v367_v37, 2  ;;  %v437_v61 = vld [vmem:[#allocation2 + $0x98] sm:$0xff] }
  0xb9   :  { %vm213_vm3 = vcmp.lt.s32.totalorder %v212_v38, 2  ;;  %vm214_vm4 = vcmp.eq.s32.totalorder %v212_v38, 0  ;;  %vm217_vm5 = vcmp.eq.s32.totalorder %v212_v38, 2  ;;  %v475_v37 = vld [vmem:[#allocation2 + $0x118] sm:$0xff]  ;;  %v474_v38 = vld [vmem:[#allocation2 + $0x110] sm:$0xff] }
  0xba   :  { %v704_v63 = vadd.s32 4294967294, %v173_v62 }
  0xbc   :  { %vm705_vm12 = vcmp.lt.s32.totalorder %v704_v63, 0 }
  0xbd   :  { %v176_v1 = vsel %vm705_vm12, 0, %v704_v63  ;;  %v436_v63 = vld [vmem:[#allocation2 + $0x90] sm:$0xff] }
  0xbe   :  { %v177_v2 = vsub.s32 32, %v176_v1  ;;  %v181_v4 = vsub.s32 4294967266, %v176_v1  ;;  %v178_v5 = vshll.u32 %v169_v50, %v176_v1  ;;  %v724_v50 = vld [vmem:[#allocation5] ss:$0 sm:$0xff] }
  0xc0   :  { %v179_v6 = vshrl.u32 %v161_v31, %v177_v2  ;;  %v182_v7 = vadd.s32 127, %v181_v4  ;;  %v435_v31 = vld [vmem:[#allocation2 + $0x88] sm:$0xff]  ;;  %v434_v4 = vld [vmem:[#allocation2 + $0x80] sm:$0xff] }
  0xc2   :  { %v180_v55 = vor.u32 %v179_v6, %v178_v5  ;;  %v183_v8 = vshll.u32 %v182_v7, 23  ;;  %v487_v7 = vld [vmem:[#allocation2 + $0x178] sm:$0xff] }
  0xc3   :  { %515 = vmatpush.msra.mxu3 %v487_v7  ;;  %v610_v7 = vld [vmem:[#allocation2 + $0x240] sm:$0xff] }
  0xc4   :  { %v184_v9 = vor.u32 4788187, %v183_v8  ;;  %v187_v12 = vcvt.s32.f32 %v180_v55  ;;  %v486_v55 = vld [vmem:[#allocation2 + $0x170] sm:$0xff]  ;;  %v485_v8 = vld [vmem:[#allocation2 + $0x168] sm:$0xff] }
  0xc5   :  { %516 = vmatpush.msra.mxu3 %v486_v55  ;;  %v609_v55 = vld [vmem:[#allocation2 + $0x238] sm:$0xff] }
  0xc6   :  { %v185_v10 = vand.u32 2147483647, %v184_v9  ;;  %v490_v9 = vld [vmem:[#allocation2 + $0x188] sm:$0xff] }
  0xc7   :  { %509 = vmatpush.msra.mxu2 %v490_v9  ;;  %517 = vmatpush.msra.mxu3 %v485_v8  ;;  %v608_v8 = vld [vmem:[#allocation2 + $0x230] sm:$0xff] }
  0xc8   :  { %v188_v13 = vmul.f32 %v187_v12, %v185_v10  ;;  %v484_v10 = vld [vmem:[#allocation2 + $0x160] sm:$0xff] }
  0xc9   :  { %v489_v12 = vld [vmem:[#allocation2 + $0x180] sm:$0xff]  ;;  %518 = vmatpush.msra.mxu3 %v484_v10 }
  0xca   :  { %v189_v14 = vxor.u32 2147483648, %v188_v13  ;;  %510 = vmatpush.msra.mxu2 %v489_v12 }
  0xcc   :  { %v190_v15 = vsel %vm69_vm13, %v189_v14, %v188_v13  ;;  %v488_v13 = vld [vmem:[%s962_s1] sm:$0x3]  ;;  %v536_v14 = vld [vmem:[#allocation2 + $0x190] sm:$0xff] }
  0xcd   :  { %v193_v17 = vsel %vm68_vm14, %v875_v11, %v190_v15  ;;  %v444_v11 = vld [vmem:[#allocation2 + $0xd0] sm:$0xff]  ;;  %v483_v15 = vld [vmem:[#allocation2 + $0x158] sm:$0xff]  ;;  %556 = vmatpush.msrb.mxu2 %v536_v14 }
  0xce   :  { %v195_v18 = vmul.f32 %v193_v17, %v193_v17  ;;  %457 = vmatpush.msra.mxu1 %v444_v11  ;;  %519 = vmatpush.msra.mxu3 %v483_v15 }
  0xd0   :  { %v196_v19 = vmul.f32 -0.001358992, %v195_v18  ;;  %v203_v21 = vmul.f32 -0.00019511016, %v195_v18  ;;  %458 = vmatpush.msra.mxu1 %v443_v49  ;;  %v570_v49 = vld [vmem:[#allocation2 + $0x1b8] sm:$0xff] }
  0xd2   :  { %v197_v23 = vadd.f32 0.041655596, %v196_v19  ;;  %v204_v24 = vadd.f32 0.008332121, %v203_v21  ;;  %459 = vmatpush.msra.mxu1 %v442_v57  ;;  %v481_v21 = vld [vmem:[#allocation2 + $0x148] sm:$0xff]  ;;  %v569_v57 = vld [vmem:[#allocation2 + $0x1b0] sm:$0xff] }
  0xd4   :  { %v198_v26 = vmul.f32 %v197_v23, %v195_v18  ;;  %v205_v27 = vmul.f32 %v204_v24, %v195_v18  ;;  %460 = vmatpush.msra.mxu1 %v441_v58  ;;  %v479_v24 = vld [vmem:[#allocation2 + $0x138] sm:$0xff]  ;;  %v568_v58 = vld [vmem:[#allocation2 + $0x1a8] sm:$0xff] }
  0xd6   :  { %v199_v29 = vadd.f32 -0.4999988, %v198_v26  ;;  %v206_v30 = vadd.f32 -0.16666654, %v205_v27  ;;  %461 = vmatpush.msra.mxu1 %v440_v3  ;;  %v478_v26 = vld [vmem:[#allocation2 + $0x130] sm:$0xff]  ;;  %v567_v3 = vld [vmem:[#allocation2 + $0x1a0] sm:$0xff] }
  0xd8   :  { %v200_v34 = vmul.f32 %v199_v29, %v195_v18  ;;  %v207_v35 = vmul.f32 %v206_v30, %v195_v18  ;;  %462 = vmatpush.msra.mxu1 %v439_v59  ;;  %v566_v59 = vld [vmem:[#allocation2 + $0x198] sm:$0xff] }
  0xda   :  { %v201_v36 = vadd.f32 1.0, %v200_v34  ;;  %v208_v20 = vadd.f32 1.0, %v207_v35  ;;  %463 = vmatpush.msra.mxu1 %v438_v60  ;;  %v619_v60 = vld [vmem:[#allocation2 + $0x288] sm:$0xff] }
  0xdc   :  { %v209_v39 = vmul.f32 %v208_v20, %v193_v17  ;;  %v218_v40 = vxor.u32 2147483648, %v201_v36  ;;  %464 = vmatpush.msra.mxu1 %v437_v61  ;;  %v482_v17 = vld [vmem:[#allocation2 + $0x150] sm:$0xff]  ;;  %v618_v61 = vld [vmem:[#allocation2 + $0x280] sm:$0xff] }
  0xdd   :  { %520 = vmatpush.msra.mxu3 %v482_v17  ;;  %v607_v17 = vld [vmem:[#allocation2 + $0x228] sm:$0xff] }
  0xde   :  { %v215_v41 = vxor.u32 2147483648, %v209_v39  ;;  %v219_v43 = vsel %vm217_vm5, %v218_v40, %v209_v39  ;;  %v374_v45 = vsel %vm372_vm2, %v218_v40, %v209_v39  ;;  %465 = vmatpush.msra.mxu1 %v436_v63  ;;  %v616_v63 = vld [vmem:[#allocation2 + $0x270] sm:$0xff] }
  0xdf   :  { %521 = vmatpush.msra.mxu3 %v481_v21  ;;  %v659_v21 = vld [vmem:[#allocation2 + $0x310] sm:$0xff] }
  0xe0   :  { %v216_v42 = vsel %vm214_vm4, %v201_v36, %v215_v41  ;;  %v371_v44 = vsel %vm369_vm1, %v201_v36, %v215_v41  ;;  %466 = vmatpush.msra.mxu1 %v435_v31  ;;  %v476_v36 = vld [vmem:[#allocation2 + $0x120] sm:$0xff]  ;;  %v473_v41 = vld [vmem:[#allocation2 + $0x108] sm:$0xff] }
  0xe1   :  { %v220_v46 = vsel %vm213_vm3, %v216_v42, %v219_v43  ;;  %v375_v47 = vsel %vm368_vm15, %v371_v44, %v374_v45  ;;  %522 = vmatpush.msra.mxu3 %v480_v22  ;;  %v472_v42 = vld [vmem:[#allocation2 + $0x100] sm:$0xff]  ;;  %v581_v44 = vld [vmem:[#allocation2 + $0x210] sm:$0xff]  ;;  %v580_v45 = vld [vmem:[#allocation2 + $0x208] sm:$0xff] }
  0xe2   :  { %v221_v48 = vsel %vm210_vm7, nan, %v220_v46  ;;  %v376_v51 = vsel %vm210_vm7, nan, %v375_v47  ;;  %467 = vmatpush.msra.mxu1 %v434_v4  ;;  %v535_v43 = vld [vmem:[%s963_s2] sm:$0x3]  ;;  %v578_v47 = vld [vmem:[#allocation2 + $0x1f8] sm:$0xff]  ;;  %v658_v22 = vld [vmem:[#allocation2 + $0x308] sm:$0xff] }
  0xe3   :  { %v377_v52 = vsel %vm222_vm6, %v376_v51, 0.0  ;;  %523 = vmatpush.msra.mxu3 %v479_v24  ;;  %v579_v46 = vld [vmem:[#allocation2 + $0x200] sm:$0xff]  ;;  %v576_v51 = vld [vmem:[#allocation2 + $0x1e8] sm:$0xff]  ;;  %v656_v24 = vld [vmem:[#allocation2 + $0x2f8] sm:$0xff]  ;;  %s827_s2 = smov [#allocation7]  }
  0xe4   :  { %v378_v28 = vsel %vm53_vm0, %v221_v48, %v377_v52  ;;  %vm491_vm0 = vcmask 130048   ;;  %v577_v48 = vld [vmem:[#allocation2 + $0x1f0] sm:$0xff]  ;;  %v575_v52 = vld [vmem:[#allocation2 + $0x1e0] sm:$0xff]  ;;  %662 = vmatpush.msrb.mxu1 %v659_v21  ;;  %s689_s7 = sshll.u32 %s827_s2, 4  ;;  %s690_s7 = int_to_ptr.vmem [resolvable:$true] %s689_s7 }
  0xe5   :  { %413 = vmatmul.f32.vlgmr.msra.gmra.mxu0 %v378_v28  ;;  %709 = vmatmul.msk.f32.vlgmr.msra.gmra.mxu2 %vm491_vm0, %v488_v13  ;;  %v574_v28 = vld [vmem:[#allocation2 + $0x1d8] sm:$0xff]  ;;  %v614_v31 = vld [vmem:[#allocation2 + $0x260] sm:$0xff] }
  0xe6   :  { %524 = vmatpush.msra.mxu3 %v478_v26  ;;  %584 = vmatpush.msra.mxu2 %v581_v44  ;;  %v726_v13 = vld [vmem:[#allocation5 + $0x2] ss:$0 sm:$0xff]  ;;  %v654_v26 = vld [vmem:[#allocation2 + $0x2e8] sm:$0xff] }
  0xe7   :  { %663 = vmatpush.msrb.mxu1 %v658_v22 }
  0xe8   :  { %525 = vmatpush.msra.mxu3 %v477_v33  ;;  %585 = vmatpush.msra.mxu2 %v580_v45  ;;  %v650_v33 = vld [vmem:[#allocation2 + $0x2c8] sm:$0xff] }
  0xea   :  { %526 = vmatpush.msra.mxu3 %v476_v36  ;;  %586 = vmatpush.msra.mxu2 %v579_v46  ;;  %v647_v36 = vld [vmem:[#allocation2 + $0x2b0] sm:$0xff] }
  0xec   :  { %527 = vmatpush.msra.mxu3 %v475_v37  ;;  %587 = vmatpush.msra.mxu2 %v578_v47  ;;  %v729_v47 = vld [vmem:[#allocation5 + $0x5] ss:$0 sm:$0xff] }
  0xed   :  { %710 = vmatmul.msk.f32.vlgmr.msrb.gmra.mxu2 %vm537_vm9, %v535_v43  ;;  %v728_v43 = vld [vmem:[#allocation5 + $0x4] ss:$0 sm:$0xff] }
  0xee   :  { %528 = vmatpush.msra.mxu3 %v474_v38  ;;  %588 = vmatpush.msra.mxu2 %v577_v48 }
  0xf0   :  { %529 = vmatpush.msra.mxu3 %v473_v41  ;;  %589 = vmatpush.msra.mxu2 %v576_v51  ;;  %v645_v41 = vld [vmem:[#allocation2 + $0x2a0] sm:$0xff] }
  0xf2   :  { %530 = vmatpush.msra.mxu3 %v472_v42  ;;  %590 = vmatpush.msra.mxu2 %v575_v52  ;;  %v644_v42 = vld [vmem:[#allocation2 + $0x298] sm:$0xff] }
  0xf4   :  { %591 = vmatpush.msra.mxu2 %v574_v28 }
  0xf6   :  { %592 = vmatpush.msra.mxu2 %v573_v32 }
  0xf8   :  { %593 = vmatpush.msra.mxu2 %v572_v0 }
  0xfa   :  { %594 = vmatpush.msra.mxu2 %v571_v53 }
  0xfc   :  { %595 = vmatpush.msra.mxu2 %v570_v49 }
  0xfe   :  { %596 = vmatpush.msra.mxu2 %v569_v57 }
 0x100   :  { %597 = vmatpush.msra.mxu2 %v568_v58 }
 0x102   :  { %598 = vmatpush.msra.mxu2 %v567_v3 }
 0x104   :  { %599 = vmatpush.msra.mxu2 %v566_v59 }
 0x162   :  { %v414_v62 = vpop.f32.mrf.mxu0 }
 0x163   :  { %v947_v1 = vadd.f32 %v724_v50, %v414_v62  ;;  %v620_v50 = vld [vmem:[#allocation2 + $0x290] sm:$0xff]  ;;  %v617_v62 = vld [vmem:[#allocation2 + $0x278] sm:$0xff] }
 0x164   :  { %623 = vmatpush.msrb.mxu0 %v620_v50 }
 0x165   :  { %v418_v2 = vand.u32 2147483647, %v947_v1  ;;  %v417_v34 = vmax.f32 %v947_v1, 0.0 }
 0x166   :  { %624 = vmatpush.msrb.mxu0 %v619_v60 }
 0x167   :  { %v419_v5 = vsub.f32 0.0, %v418_v2  ;;  %v613_v2 = vld [vmem:[#allocation2 + $0x258] sm:$0xff] }
 0x168   :  { %625 = vmatpush.msrb.mxu0 %v618_v61  ;;  %v512_v4 = vpop.f32.mrf.mxu2 }
 0x169   :  { %v420_v6 = vmul.f32 1.442695, %v419_v5  ;;  %v612_v5 = vld [vmem:[#allocation2 + $0x250] sm:$0xff] }
 0x16a   :  { %626 = vmatpush.msrb.mxu0 %v617_v62 }
 0x16b   :  { %732 = vpow2.f32 %v420_v6  ;;  %v611_v6 = vld [vmem:[#allocation2 + $0x248] sm:$0xff] }
 0x16c   :  { %627 = vmatpush.msrb.mxu0 %v616_v63 }
 0x170   :  { %v558_v10 = vpop.f32.mrf.mxu2 }
 0x171   :  { %v733_v16 = vpop.eup %732 }
 0x172   :  { %v422_v18 = vadd.f32 1.0, %v733_v16  ;;  %v425_v19 = vmul.f32 -0.5, %v733_v16  ;;  %v428_v25 = vand.u32 2147483647, %v733_v16 }
 0x174   :  { %734 = vlog2.f32 %v422_v18  ;;  %v426_v23 = vadd.f32 1.0, %v425_v19  ;;  %vm429_vm8 = vcmp.lt.f32.partialorder %v428_v25, 0.0004427343  ;;  %v606_v18 = vld [vmem:[#allocation2 + $0x220] sm:$0xff]  ;;  %v605_v19 = vld [vmem:[#allocation2 + $0x218] sm:$0xff]  ;;  %v655_v25 = vld [vmem:[#allocation2 + $0x2f0] sm:$0xff] }
 0x176   :  { %v427_v30 = vmul.f32 %v733_v16, %v426_v23  ;;  %v657_v23 = vld [vmem:[#allocation2 + $0x300] sm:$0xff] }
 0x177   :  { %664 = vmatpush.msrb.mxu1 %v657_v23 }
 0x179   :  { %665 = vmatpush.msrb.mxu1 %v656_v24 }
 0x17a   :  { %v735_v27 = vpop.eup %734 }
 0x17b   :  { %v424_v29 = vmul.f32 0.6931472, %v735_v27  ;;  %666 = vmatpush.msrb.mxu1 %v655_v25  ;;  %v653_v27 = vld [vmem:[#allocation2 + $0x2e0] sm:$0xff] }
 0x17d   :  { %v430_v35 = vsel %vm429_vm8, %v427_v30, %v424_v29  ;;  %667 = vmatpush.msrb.mxu1 %v654_v26  ;;  %v652_v29 = vld [vmem:[#allocation2 + $0x2d8] sm:$0xff]  ;;  %v651_v30 = vld [vmem:[#allocation2 + $0x2d0] sm:$0xff] }
 0x17e   :  { %v431_v20 = vadd.f32 %v430_v35, %v417_v34  ;;  %v649_v34 = vld [vmem:[#allocation2 + $0x2c0] sm:$0xff]  ;;  %v648_v35 = vld [vmem:[#allocation2 + $0x2b8] sm:$0xff] }
 0x17f   :  { %668 = vmatpush.msrb.mxu1 %v653_v27 }
 0x180   :  { %736 = vtanh.f32 %v431_v20  ;;  %v727_v20 = vld [vmem:[#allocation5 + $0x3] ss:$0 sm:$0xff] }
 0x181   :  { %669 = vmatpush.msrb.mxu1 %v652_v29 }
 0x183   :  { %670 = vmatpush.msrb.mxu1 %v651_v30 }
 0x185   :  { %671 = vmatpush.msrb.mxu1 %v650_v33 }
 0x186   :  { %v737_v39 = vpop.eup %736 }
 0x187   :  { %v433_v40 = vmul.f32 %v737_v39, %v947_v1  ;;  %v615_v1 = vld [vmem:[#allocation2 + $0x268] sm:$0xff]  ;;  %672 = vmatpush.msrb.mxu1 %v649_v34 }
 0x188   :  { %628 = vmatpush.msrb.mxu0 %v615_v1 }
 0x189   :  { %468 = vmatmul.f32.vlgmr.msra.gmra.mxu1 %v433_v40  ;;  %v646_v40 = vld [vmem:[#allocation2 + $0x2a8] sm:$0xff] }
 0x18a   :  { %629 = vmatpush.msrb.mxu0 %v614_v31  ;;  %673 = vmatpush.msrb.mxu1 %v648_v35 }
 0x18c   :  { %630 = vmatpush.msrb.mxu0 %v613_v2  ;;  %674 = vmatpush.msrb.mxu1 %v647_v36 }
 0x18e   :  { %631 = vmatpush.msrb.mxu0 %v612_v5  ;;  %675 = vmatpush.msrb.mxu1 %v646_v40 }
 0x190   :  { %632 = vmatpush.msrb.mxu0 %v611_v6  ;;  %676 = vmatpush.msrb.mxu1 %v645_v41 }
 0x192   :  { %633 = vmatpush.msrb.mxu0 %v610_v7  ;;  %677 = vmatpush.msrb.mxu1 %v644_v42 }
 0x194   :  { %634 = vmatpush.msrb.mxu0 %v609_v55 }
 0x196   :  { %635 = vmatpush.msrb.mxu0 %v608_v8 }
 0x198   :  { %636 = vmatpush.msrb.mxu0 %v607_v17 }
 0x19a   :  { %637 = vmatpush.msrb.mxu0 %v606_v18 }
 0x19c   :  { %638 = vmatpush.msrb.mxu0 %v605_v19 }
 0x206   :  { %v469_v56 = vpop.f32.mrf.mxu1 }
 0x207   :  { %v470_v11 = vadd.f32 %v725_v54, %v469_v56 }
 0x209   :  { %531 = vmatmul.f32.vlgmr.msra.gmra.mxu3 %v470_v11 }
 0x28c   :  { %v532_v9 = vpop.f32.mrf.mxu3 }
 0x28d   :  { %v533_v12 = vadd.f32 %v532_v9, %v512_v4 }
 0x28f   :  { %v561_v14 = vadd.f32 %v558_v10, %v533_v12 }
 0x291   :  { %v564_v15 = vadd.f32 %v726_v13, %v561_v14 }
 0x293   :  { %v565_v16 = vmax.f32 %v564_v15, 0.0 }
 0x295   :  { %600 = vmatmul.f32.vlgmr.msra.gmra.mxu2 %v565_v16 }
 0x318   :  { %v601_v37 = vpop.f32.mrf.mxu2 }
 0x319   :  { %v602_v38 = vadd.f32 %v727_v20, %v601_v37 }
 0x31b   :  { %v604_v39 = vmax.f32 %v602_v38, 0.0 }
 0x31d   :  { %639 = vmatmul.f32.vlgmr.msrb.gmra.mxu0 %v604_v39 }
 0x39a   :  { %v640_v44 = vpop.f32.mrf.mxu0 }
 0x39b   :  { %v641_v45 = vadd.f32 %v728_v43, %v640_v44 }
 0x39d   :  { %v643_v46 = vmax.f32 %v641_v45, 0.0 }
 0x39f   :  { %678 = vmatmul.f32.vlgmr.msrb.gmra.mxu1 %v643_v46 }
 0x41c   :  { %v679_v48 = vpop.f32.mrf.mxu1 }
 0x41d   :  { %v680_v51 = vadd.f32 %v729_v47, %v679_v48 }
 0x41f   :  { %683 = vst.msk [vmem:[#allocation7] sm:$0x3] %vm682_vm10, %v680_v51 }
 0x420   :  { %694 = dma.vmem_to_hbm [thread:$0]  %s690_s7, 32, %s692_s10, [#allocation4]  }
 0x421   :  { %814 = dma.done.wait [#allocation4], 32  }
 0x422   :  { %815 = vsyncadd [#allocation4], 4294967264 }
 0x423   :  { %699 = vsyncpa [#allocation3], 1 }
 0x424   :  { %700 = vsyncpa [#allocation6], 1 }
 0x425   :  { %701 = vsyncpa [#allocation4], 1 }

</bundles_post_ra>
